<compile_context>
chip_gen: v5e
topology: v5e:2x2
jax: 0.10.0
libtpu: 0.0.40
codegen_flags: <defaults>
</compile_context>

<pallas_src>
import jax
import jax.numpy as jnp
from jax.experimental import pallas as pl

# ---------------- config (small, consistent with the module defaults) ----------------
DIMS_IN = 32          # params['dims_in']  (must equal internal_size, see note above)
DIMS_C = 8            # params['dims_c']
INTERNAL = 32         # network_params['internal_size']
N_BLOCKS = 4          # network_params['n_blocks']
NEG_SLOPE = 0.01      # nn.LeakyReLU default
BATCH = 16

assert DIMS_IN == INTERNAL, "DenseNet.forward requires dims_in == internal_size (t/x skip adds)"

D_XC = DIMS_IN + DIMS_C          # concatenated [x, c] feature width
SLAB_LANES = 128                 # lane-dense parameter slab width


# ---------------------------- packed parameter slab layout ----------------------------
def _align8(n):
    return ((n + 7) // 8) * 8


def _build_layout():
    layout = {}
    row = 0

    def place(name, rows):
        nonlocal row
        layout[name] = row
        row = _align8(row + rows)

    place("w_in", D_XC)                 # (D_XC, INTERNAL)
    place("b_in", 1)                    # (1, INTERNAL)
    place("w_r0", INTERNAL)             # (INTERNAL, INTERNAL)
    place("b_r0", 1)
    place("w_r1", INTERNAL)
    place("b_r1", 1)
    for i in range(N_BLOCKS):
        place(f"w_blk{i}", INTERNAL)    # fused (INTERNAL, 2*INTERNAL): [residual | layer]
        place(f"b_blk{i}", 1)           # fused (1, 2*INTERNAL)
    place("w_f0", INTERNAL)             # (INTERNAL, 2*INTERNAL)
    place("b_f0", 1)
    place("w_f1", 2 * INTERNAL)         # (2*INTERNAL, DIMS_IN)
    place("b_f1", 1)
    return layout, _align8(row)


LAYOUT, SLAB_ROWS = _build_layout()


def _leaky_relu(v):
    return jnp.where(v >= 0, v, NEG_SLOPE * v)


# ---------------------------------- Pallas kernel ------------------------------------
def densenet_kernel(xc_ref, t_ref, slab_ref, out_ref):
    def wslice(name, rows, cols):
        r0 = LAYOUT[name]                       # static python ints -> free ref slice
        return slab_ref[r0:r0 + rows, 0:cols]

    xc = xc_ref[...]
    t = t_ref[...]

    # inputs_dense: Linear(dims_in + dims_c -> internal) + LeakyReLU (x/c concat done host-side)
    h = jnp.dot(xc, wslice("w_in", D_XC, INTERNAL), preferred_element_type=jnp.float32)
    h = _leaky_relu(h + wslice("b_in", 1, INTERNAL))

    # residual trunk on (inputs_dense + t): Linear, LeakyReLU, Linear
    h = h + t
    z = jnp.dot(h, wslice("w_r0", INTERNAL, INTERNAL), preferred_element_type=jnp.float32)
    z = _leaky_relu(z + wslice("b_r0", 1, INTERNAL))
    cur = jnp.dot(z, wslice("w_r1", INTERNAL, INTERNAL), preferred_element_type=jnp.float32)
    cur = cur + wslice("b_r1", 1, INTERNAL)

    # ResNetDense blocks, fused: one (internal -> 2*internal) matmul per block.
    #   rz[:, :INTERNAL]  = residual Linear(x)
    #   rz[:, INTERNAL:]  = hidden Linear(x)  (LeakyReLU applied)
    for i in range(N_BLOCKS):
        rz = jnp.dot(cur, wslice(f"w_blk{i}", INTERNAL, 2 * INTERNAL),
                     preferred_element_type=jnp.float32)
        rz = rz + wslice(f"b_blk{i}", 1, 2 * INTERNAL)
        cur = rz[:, :INTERNAL] + _leaky_relu(rz[:, INTERNAL:])

    # final_layer: Linear(internal -> 2*internal), LeakyReLU, Linear(2*internal -> dims_in)
    f = jnp.dot(cur, wslice("w_f0", INTERNAL, 2 * INTERNAL), preferred_element_type=jnp.float32)
    f = _leaky_relu(f + wslice("b_f0", 1, 2 * INTERNAL))
    out = jnp.dot(f, wslice("w_f1", 2 * INTERNAL, DIMS_IN), preferred_element_type=jnp.float32)
    out = out + wslice("b_f1", 1, DIMS_IN)

    # output = final_layer(x) + x   (valid because DIMS_IN == INTERNAL)
    out_ref[...] = out + cur


# ----------------------------------- wrapper ------------------------------------------
@jax.jit
def densenet_forward(t, x, c, slab):
    B = x.shape[0]
    xc = jnp.concatenate([x, c], axis=1)        # fold inputs_dense concat host-side
    return pl.pallas_call(
        densenet_kernel,
        out_shape=jax.ShapeDtypeStruct((B, DIMS_IN), jnp.float32),
        # no grid / no BlockSpecs: whole arrays (tiny) live in VMEM for a single invocation
    )(xc, t, slab)


# ----------------------------- deterministic param init -------------------------------
def init_params(key):
    """Returns the unfused, PyTorch-structured parameters (used by the reference)."""
    def linear(key, fan_in, fan_out):
        kw, kb = jax.random.split(key)
        bound = 1.0 / (fan_in ** 0.5)
        w = jax.random.uniform(kw, (fan_in, fan_out), jnp.float32, -bound, bound)
        b = jax.random.uniform(kb, (1, fan_out), jnp.float32, -bound, bound)
        return w, b

    keys = jax.random.split(key, 5 + 2 * N_BLOCKS)
    ki = iter(keys)

    w_in, b_in = linear(next(ki), D_XC, INTERNAL)           # inputs_dense
    w_r0, b_r0 = linear(next(ki), INTERNAL, INTERNAL)       # residual trunk Linear 1
    w_r1, b_r1 = linear(next(ki), INTERNAL, INTERNAL)       # residual trunk Linear 2
    blocks = []
    for _ in range(N_BLOCKS):
        wr, br = linear(next(ki), INTERNAL, INTERNAL)       # ResNetDense.residual
        wl, bl = linear(next(ki), INTERNAL, INTERNAL)       # ResNetDense.layers[0]
        blocks.append((wr, br, wl, bl))
    w_f0, b_f0 = linear(next(ki), INTERNAL, 2 * INTERNAL)   # final_layer Linear 1
    w_f1, b_f1 = linear(next(ki), 2 * INTERNAL, DIMS_IN)    # final_layer Linear 2

    return (w_in, b_in, w_r0, b_r0, w_r1, b_r1, blocks, w_f0, b_f0, w_f1, b_f1)


def pack_params(ref_params):
    """Pack all weights/biases into one lane-dense (SLAB_ROWS, 128) f32 slab (single DMA)."""
    (w_in, b_in, w_r0, b_r0, w_r1, b_r1, blocks, w_f0, b_f0, w_f1, b_f1) = ref_params
    slab = jnp.zeros((SLAB_ROWS, SLAB_LANES), jnp.float32)

    def put(slab, name, arr):
        r0 = LAYOUT[name]
        rows, cols = arr.shape
        return slab.at[r0:r0 + rows, 0:cols].set(arr)

    slab = put(slab, "w_in", w_in)
    slab = put(slab, "b_in", b_in)
    slab = put(slab, "w_r0", w_r0)
    slab = put(slab, "b_r0", b_r0)
    slab = put(slab, "w_r1", w_r1)
    slab = put(slab, "b_r1", b_r1)
    for i, (wr, br, wl, bl) in enumerate(blocks):
        slab = put(slab, f"w_blk{i}", jnp.concatenate([wr, wl], axis=1))   # (32, 64)
        slab = put(slab, f"b_blk{i}", jnp.concatenate([br, bl], axis=1))   # (1, 64)
    slab = put(slab, "w_f0", w_f0)
    slab = put(slab, "b_f0", b_f0)
    slab = put(slab, "w_f1", w_f1)
    slab = put(slab, "b_f1", b_f1)
    return slab


# --------------------------------- pure-JAX reference ----------------------------------
def densenet_ref(t, x, c, ref_params):
    (w_in, b_in, w_r0, b_r0, w_r1, b_r1, blocks, w_f0, b_f0, w_f1, b_f1) = ref_params
    xc = jnp.concatenate([x, c], axis=1)
    h = _leaky_relu(xc @ w_in + b_in)
    h = h + t
    z = _leaky_relu(h @ w_r0 + b_r0)
    cur = z @ w_r1 + b_r1
    for (wr, br, wl, bl) in blocks:
        res = cur @ wr + br
        lay = _leaky_relu(cur @ wl + bl)
        cur = res + lay
    f = _leaky_relu(cur @ w_f0 + b_f0)
    out = f @ w_f1 + b_f1
    return out + cur


if __name__ == "__main__":
    key = jax.random.PRNGKey(0)
    k_p, k_t, k_x, k_c = jax.random.split(key, 4)

    ref_params = init_params(k_p)
    slab = pack_params(ref_params)

    t = jax.random.normal(k_t, (BATCH, INTERNAL), jnp.float32)   # t.shape[-1] == x.shape[-1]
    x = jax.random.normal(k_x, (BATCH, DIMS_IN), jnp.float32)
    c = jax.random.normal(k_c, (BATCH, DIMS_C), jnp.float32)

    out = densenet_forward(t, x, c, slab)
    out = jax.block_until_ready(out)

    ref = densenet_ref(t, x, c, ref_params)
    assert out.shape == (BATCH, DIMS_IN)
    assert jnp.allclose(out, ref, atol=1e-5, rtol=1e-5), "Pallas output mismatch vs JAX reference"

    print("KERNEL_OK")
</pallas_src>

<mosaic_0001>
module attributes {stable_mosaic.version = 11 : i64} {
  func.func @densenet_kernel(%arg0: memref<16x40xf32, #tpu.memory_space<vmem>>, %arg1: memref<16x32xf32, #tpu.memory_space<vmem>>, %arg2: memref<400x128xf32, #tpu.memory_space<vmem>>, %arg3: memref<16x32xf32, #tpu.memory_space<vmem>>) attributes {dimension_semantics = [], scalar_prefetch = 0 : i64, scratch_operands = 0 : i64, tpu.core_type = #tpu.core_type<tc>} {
    %c0 = arith.constant 0 : index
    %c0_0 = arith.constant 0 : index
    %0 = vector.load %arg0[%c0, %c0_0] : memref<16x40xf32, #tpu.memory_space<vmem>>, vector<16x40xf32>
    %c0_1 = arith.constant 0 : index
    %c0_2 = arith.constant 0 : index
    %1 = vector.load %arg1[%c0_1, %c0_2] : memref<16x32xf32, #tpu.memory_space<vmem>>, vector<16x32xf32>
    %c0_3 = arith.constant 0 : index
    %c0_4 = arith.constant 0 : index
    %2 = vector.load %arg2[%c0_3, %c0_4] : memref<400x128xf32, #tpu.memory_space<vmem>>, vector<40x32xf32>
    %cst = arith.constant dense<0.000000e+00> : vector<16x32xf32>
    %3 = tpu.matmul %0, %2, %cst {dimension_numbers = #tpu.dot_dimension_numbers<[1], [0], [0], [1], [0, 0, 1, 1], [], []>} : vector<16x40xf32>, vector<40x32xf32>, vector<16x32xf32> -> vector<16x32xf32>
    %c40 = arith.constant 40 : index
    %c0_5 = arith.constant 0 : index
    %4 = vector.load %arg2[%c40, %c0_5] : memref<400x128xf32, #tpu.memory_space<vmem>>, vector<1x32xf32>
    %5 = vector.broadcast %4 : vector<1x32xf32> to vector<16x32xf32>
    %6 = arith.addf %3, %5 : vector<16x32xf32>
    %cst_6 = arith.constant 0.000000e+00 : f32
    %7 = vector.broadcast %cst_6 : f32 to vector<16x32xf32>
    %8 = arith.cmpf oge, %6, %7 : vector<16x32xf32>
    %cst_7 = arith.constant 0.00999999977 : f32
    %9 = vector.broadcast %cst_7 : f32 to vector<16x32xf32>
    %10 = arith.mulf %9, %6 : vector<16x32xf32>
    %11 = arith.select %8, %6, %10 : vector<16x32xi1>, vector<16x32xf32>
    %12 = arith.addf %11, %1 : vector<16x32xf32>
    %c48 = arith.constant 48 : index
    %c0_8 = arith.constant 0 : index
    %13 = vector.load %arg2[%c48, %c0_8] : memref<400x128xf32, #tpu.memory_space<vmem>>, vector<32x32xf32>
    %cst_9 = arith.constant dense<0.000000e+00> : vector<16x32xf32>
    %14 = tpu.matmul %12, %13, %cst_9 {dimension_numbers = #tpu.dot_dimension_numbers<[1], [0], [0], [1], [0, 0, 1, 1], [], []>} : vector<16x32xf32>, vector<32x32xf32>, vector<16x32xf32> -> vector<16x32xf32>
    %c80 = arith.constant 80 : index
    %c0_10 = arith.constant 0 : index
    %15 = vector.load %arg2[%c80, %c0_10] : memref<400x128xf32, #tpu.memory_space<vmem>>, vector<1x32xf32>
    %16 = vector.broadcast %15 : vector<1x32xf32> to vector<16x32xf32>
    %17 = arith.addf %14, %16 : vector<16x32xf32>
    %cst_11 = arith.constant 0.000000e+00 : f32
    %18 = vector.broadcast %cst_11 : f32 to vector<16x32xf32>
    %19 = arith.cmpf oge, %17, %18 : vector<16x32xf32>
    %cst_12 = arith.constant 0.00999999977 : f32
    %20 = vector.broadcast %cst_12 : f32 to vector<16x32xf32>
    %21 = arith.mulf %20, %17 : vector<16x32xf32>
    %22 = arith.select %19, %17, %21 : vector<16x32xi1>, vector<16x32xf32>
    %c88 = arith.constant 88 : index
    %c0_13 = arith.constant 0 : index
    %23 = vector.load %arg2[%c88, %c0_13] : memref<400x128xf32, #tpu.memory_space<vmem>>, vector<32x32xf32>
    %cst_14 = arith.constant dense<0.000000e+00> : vector<16x32xf32>
    %24 = tpu.matmul %22, %23, %cst_14 {dimension_numbers = #tpu.dot_dimension_numbers<[1], [0], [0], [1], [0, 0, 1, 1], [], []>} : vector<16x32xf32>, vector<32x32xf32>, vector<16x32xf32> -> vector<16x32xf32>
    %c120 = arith.constant 120 : index
    %c0_15 = arith.constant 0 : index
    %25 = vector.load %arg2[%c120, %c0_15] : memref<400x128xf32, #tpu.memory_space<vmem>>, vector<1x32xf32>
    %26 = vector.broadcast %25 : vector<1x32xf32> to vector<16x32xf32>
    %27 = arith.addf %24, %26 : vector<16x32xf32>
    %c128 = arith.constant 128 : index
    %c0_16 = arith.constant 0 : index
    %28 = vector.load %arg2[%c128, %c0_16] : memref<400x128xf32, #tpu.memory_space<vmem>>, vector<32x64xf32>
    %cst_17 = arith.constant dense<0.000000e+00> : vector<16x64xf32>
    %29 = tpu.matmul %27, %28, %cst_17 {dimension_numbers = #tpu.dot_dimension_numbers<[1], [0], [0], [1], [0, 0, 1, 1], [], []>} : vector<16x32xf32>, vector<32x64xf32>, vector<16x64xf32> -> vector<16x64xf32>
    %c160 = arith.constant 160 : index
    %c0_18 = arith.constant 0 : index
    %30 = vector.load %arg2[%c160, %c0_18] : memref<400x128xf32, #tpu.memory_space<vmem>>, vector<1x64xf32>
    %31 = vector.broadcast %30 : vector<1x64xf32> to vector<16x64xf32>
    %32 = arith.addf %29, %31 : vector<16x64xf32>
    %33 = vector.extract_strided_slice %32 {offsets = [0, 0], sizes = [16, 32], strides = [1, 1]} : vector<16x64xf32> to vector<16x32xf32>
    %34 = vector.extract_strided_slice %32 {offsets = [0, 32], sizes = [16, 32], strides = [1, 1]} : vector<16x64xf32> to vector<16x32xf32>
    %cst_19 = arith.constant 0.000000e+00 : f32
    %35 = vector.broadcast %cst_19 : f32 to vector<16x32xf32>
    %36 = arith.cmpf oge, %34, %35 : vector<16x32xf32>
    %cst_20 = arith.constant 0.00999999977 : f32
    %37 = vector.broadcast %cst_20 : f32 to vector<16x32xf32>
    %38 = arith.mulf %37, %34 : vector<16x32xf32>
    %39 = arith.select %36, %34, %38 : vector<16x32xi1>, vector<16x32xf32>
    %40 = arith.addf %33, %39 : vector<16x32xf32>
    %c168 = arith.constant 168 : index
    %c0_21 = arith.constant 0 : index
    %41 = vector.load %arg2[%c168, %c0_21] : memref<400x128xf32, #tpu.memory_space<vmem>>, vector<32x64xf32>
    %cst_22 = arith.constant dense<0.000000e+00> : vector<16x64xf32>
    %42 = tpu.matmul %40, %41, %cst_22 {dimension_numbers = #tpu.dot_dimension_numbers<[1], [0], [0], [1], [0, 0, 1, 1], [], []>} : vector<16x32xf32>, vector<32x64xf32>, vector<16x64xf32> -> vector<16x64xf32>
    %c200 = arith.constant 200 : index
    %c0_23 = arith.constant 0 : index
    %43 = vector.load %arg2[%c200, %c0_23] : memref<400x128xf32, #tpu.memory_space<vmem>>, vector<1x64xf32>
    %44 = vector.broadcast %43 : vector<1x64xf32> to vector<16x64xf32>
    %45 = arith.addf %42, %44 : vector<16x64xf32>
    %46 = vector.extract_strided_slice %45 {offsets = [0, 0], sizes = [16, 32], strides = [1, 1]} : vector<16x64xf32> to vector<16x32xf32>
    %47 = vector.extract_strided_slice %45 {offsets = [0, 32], sizes = [16, 32], strides = [1, 1]} : vector<16x64xf32> to vector<16x32xf32>
    %cst_24 = arith.constant 0.000000e+00 : f32
    %48 = vector.broadcast %cst_24 : f32 to vector<16x32xf32>
    %49 = arith.cmpf oge, %47, %48 : vector<16x32xf32>
    %cst_25 = arith.constant 0.00999999977 : f32
    %50 = vector.broadcast %cst_25 : f32 to vector<16x32xf32>
    %51 = arith.mulf %50, %47 : vector<16x32xf32>
    %52 = arith.select %49, %47, %51 : vector<16x32xi1>, vector<16x32xf32>
    %53 = arith.addf %46, %52 : vector<16x32xf32>
    %c208 = arith.constant 208 : index
    %c0_26 = arith.constant 0 : index
    %54 = vector.load %arg2[%c208, %c0_26] : memref<400x128xf32, #tpu.memory_space<vmem>>, vector<32x64xf32>
    %cst_27 = arith.constant dense<0.000000e+00> : vector<16x64xf32>
    %55 = tpu.matmul %53, %54, %cst_27 {dimension_numbers = #tpu.dot_dimension_numbers<[1], [0], [0], [1], [0, 0, 1, 1], [], []>} : vector<16x32xf32>, vector<32x64xf32>, vector<16x64xf32> -> vector<16x64xf32>
    %c240 = arith.constant 240 : index
    %c0_28 = arith.constant 0 : index
    %56 = vector.load %arg2[%c240, %c0_28] : memref<400x128xf32, #tpu.memory_space<vmem>>, vector<1x64xf32>
    %57 = vector.broadcast %56 : vector<1x64xf32> to vector<16x64xf32>
    %58 = arith.addf %55, %57 : vector<16x64xf32>
    %59 = vector.extract_strided_slice %58 {offsets = [0, 0], sizes = [16, 32], strides = [1, 1]} : vector<16x64xf32> to vector<16x32xf32>
    %60 = vector.extract_strided_slice %58 {offsets = [0, 32], sizes = [16, 32], strides = [1, 1]} : vector<16x64xf32> to vector<16x32xf32>
    %cst_29 = arith.constant 0.000000e+00 : f32
    %61 = vector.broadcast %cst_29 : f32 to vector<16x32xf32>
    %62 = arith.cmpf oge, %60, %61 : vector<16x32xf32>
    %cst_30 = arith.constant 0.00999999977 : f32
    %63 = vector.broadcast %cst_30 : f32 to vector<16x32xf32>
    %64 = arith.mulf %63, %60 : vector<16x32xf32>
    %65 = arith.select %62, %60, %64 : vector<16x32xi1>, vector<16x32xf32>
    %66 = arith.addf %59, %65 : vector<16x32xf32>
    %c248 = arith.constant 248 : index
    %c0_31 = arith.constant 0 : index
    %67 = vector.load %arg2[%c248, %c0_31] : memref<400x128xf32, #tpu.memory_space<vmem>>, vector<32x64xf32>
    %cst_32 = arith.constant dense<0.000000e+00> : vector<16x64xf32>
    %68 = tpu.matmul %66, %67, %cst_32 {dimension_numbers = #tpu.dot_dimension_numbers<[1], [0], [0], [1], [0, 0, 1, 1], [], []>} : vector<16x32xf32>, vector<32x64xf32>, vector<16x64xf32> -> vector<16x64xf32>
    %c280 = arith.constant 280 : index
    %c0_33 = arith.constant 0 : index
    %69 = vector.load %arg2[%c280, %c0_33] : memref<400x128xf32, #tpu.memory_space<vmem>>, vector<1x64xf32>
    %70 = vector.broadcast %69 : vector<1x64xf32> to vector<16x64xf32>
    %71 = arith.addf %68, %70 : vector<16x64xf32>
    %72 = vector.extract_strided_slice %71 {offsets = [0, 0], sizes = [16, 32], strides = [1, 1]} : vector<16x64xf32> to vector<16x32xf32>
    %73 = vector.extract_strided_slice %71 {offsets = [0, 32], sizes = [16, 32], strides = [1, 1]} : vector<16x64xf32> to vector<16x32xf32>
    %cst_34 = arith.constant 0.000000e+00 : f32
    %74 = vector.broadcast %cst_34 : f32 to vector<16x32xf32>
    %75 = arith.cmpf oge, %73, %74 : vector<16x32xf32>
    %cst_35 = arith.constant 0.00999999977 : f32
    %76 = vector.broadcast %cst_35 : f32 to vector<16x32xf32>
    %77 = arith.mulf %76, %73 : vector<16x32xf32>
    %78 = arith.select %75, %73, %77 : vector<16x32xi1>, vector<16x32xf32>
    %79 = arith.addf %72, %78 : vector<16x32xf32>
    %c288 = arith.constant 288 : index
    %c0_36 = arith.constant 0 : index
    %80 = vector.load %arg2[%c288, %c0_36] : memref<400x128xf32, #tpu.memory_space<vmem>>, vector<32x64xf32>
    %cst_37 = arith.constant dense<0.000000e+00> : vector<16x64xf32>
    %81 = tpu.matmul %79, %80, %cst_37 {dimension_numbers = #tpu.dot_dimension_numbers<[1], [0], [0], [1], [0, 0, 1, 1], [], []>} : vector<16x32xf32>, vector<32x64xf32>, vector<16x64xf32> -> vector<16x64xf32>
    %c320 = arith.constant 320 : index
    %c0_38 = arith.constant 0 : index
    %82 = vector.load %arg2[%c320, %c0_38] : memref<400x128xf32, #tpu.memory_space<vmem>>, vector<1x64xf32>
    %83 = vector.broadcast %82 : vector<1x64xf32> to vector<16x64xf32>
    %84 = arith.addf %81, %83 : vector<16x64xf32>
    %cst_39 = arith.constant 0.000000e+00 : f32
    %85 = vector.broadcast %cst_39 : f32 to vector<16x64xf32>
    %86 = arith.cmpf oge, %84, %85 : vector<16x64xf32>
    %cst_40 = arith.constant 0.00999999977 : f32
    %87 = vector.broadcast %cst_40 : f32 to vector<16x64xf32>
    %88 = arith.mulf %87, %84 : vector<16x64xf32>
    %89 = arith.select %86, %84, %88 : vector<16x64xi1>, vector<16x64xf32>
    %c328 = arith.constant 328 : index
    %c0_41 = arith.constant 0 : index
    %90 = vector.load %arg2[%c328, %c0_41] : memref<400x128xf32, #tpu.memory_space<vmem>>, vector<64x32xf32>
    %cst_42 = arith.constant dense<0.000000e+00> : vector<16x32xf32>
    %91 = tpu.matmul %89, %90, %cst_42 {dimension_numbers = #tpu.dot_dimension_numbers<[1], [0], [0], [1], [0, 0, 1, 1], [], []>} : vector<16x64xf32>, vector<64x32xf32>, vector<16x32xf32> -> vector<16x32xf32>
    %c392 = arith.constant 392 : index
    %c0_43 = arith.constant 0 : index
    %92 = vector.load %arg2[%c392, %c0_43] : memref<400x128xf32, #tpu.memory_space<vmem>>, vector<1x32xf32>
    %93 = vector.broadcast %92 : vector<1x32xf32> to vector<16x32xf32>
    %94 = arith.addf %91, %93 : vector<16x32xf32>
    %95 = arith.addf %94, %79 : vector<16x32xf32>
    %c0_44 = arith.constant 0 : index
    %c0_45 = arith.constant 0 : index
    %96 = vector.load %arg3[%c0_44, %c0_45] : memref<16x32xf32, #tpu.memory_space<vmem>>, vector<16x32xf32>
    tpu.vector_store %arg3[%c0_44, %c0_45], %95 {strides = array<i32>} : memref<16x32xf32, #tpu.memory_space<vmem>>, vector<16x32xf32>,
    return
  }
}

</mosaic_0001>

<bundles_post_ra>
// kernel: densenet_forward.1
= control target key start
LH: loop header
LB: loop body
LE: loop exit
PB: predicated region body
PF: predicated region fallthrough
CT: control target
= control target key end

     0   :  { %8 = vsyncpa [#allocation3], 0  ;;  %s626_s0 = inlined_call_operand.vmem [shape: f32[16,40], index: 0, kind: input, shape index: {}]   ;;  %s627_s1 = inlined_call_operand.vmem [shape: f32[16,32], index: 1, kind: input, shape index: {}]   ;;  %s628_s2 = inlined_call_operand.hbm [shape: f32[400,128], index: 2, kind: input, shape index: {}]   ;;  %s629_s3 = inlined_call_operand.hbm [shape: f32[16,32], index: 3, kind: output, shape index: {}]  }
   0x1   :  { %9 = vsyncpa [#allocation4], 0  ;;  %s18_s14 = sshll.u32 %s628_s2, 4  ;;  %s553_s15 = smov [#allocation2]   ;;  %s19_s14 = int_to_ptr.hbm [resolvable:$true] %s18_s14 }
   0x2   :  { %s20_s16 = sshll.u32 %s553_s15, 4  ;;  %s554_s17 = smov 128   ;;  %s21_s16 = int_to_ptr.vmem [resolvable:$true] %s20_s16 }
   0x3   :  { %s555_s18 = smov 8  }
   0x4   :  { %26 = dma.hbm_to_vmem [thread:$0]  %s19_s14, 6400, %s21_s16, [#allocation3], %s554_s17, %s554_s17, %s555_s18  }
   0x5   :  { %549 = dma.done.wait [#allocation3], 6400  }
   0x6   :  { %550 = vsyncadd [#allocation3], 4294960896  ;;  %v39_v0 = vld [vmem:[#allocation2 + $0x20] sm:$0xff]  ;;  %v38_v1 = vld [vmem:[#allocation2 + $0x18] sm:$0xff]  ;;  %vm42_vm0 = vcmask 326656   ;;  %vm86_vm2 = vcmask 261120  }
   0x7   :  { %60 = vmatpush.msra.mxu0 %v39_v0  ;;  %v37_v2 = vld [vmem:[#allocation2 + $0x10] sm:$0xff]  ;;  %v36_v3 = vld [vmem:[#allocation2 + $0x8] sm:$0xff]  ;;  %v35_v4 = vld [vmem:[#allocation2] sm:$0xff]  ;;  %vm412_vm15 = vcmask 523264   ;;  %s557_s25 = smov [#allocation5]   ;;  %s452_s29 = sshll.u32 %s629_s3, 4  ;;  %s453_s29 = int_to_ptr.hbm [resolvable:$true] %s452_s29 }
   0x8   :  { %v31_v5 = vld [vmem:[%s626_s0] sm:$0xff]  ;;  %v32_v6 = vld [vmem:[%s626_s0 + $0x8] sm:$0xff]  ;;  %v81_v9 = vld [vmem:[#allocation2 + $0x38] sm:$0xff]  ;;  %s450_s26 = sshll.u32 %s557_s25, 4  ;;  %s451_s26 = int_to_ptr.vmem [resolvable:$true] %s450_s26 }
   0x9   :  { %61 = vmatpush.msra.mxu0 %v38_v1  ;;  %v83_v7 = vld [vmem:[#allocation2 + $0x48] sm:$0xff]  ;;  %v82_v8 = vld [vmem:[#allocation2 + $0x40] sm:$0xff]  ;;  %v80_v10 = vld [vmem:[#allocation2 + $0x30] sm:$0xff] }
   0xa   :  { %105 = vmatpush.msra.mxu1 %v83_v7  ;;  %483 = vmatpush.msra.mxu2 %v83_v7  ;;  %v125_v11 = vld [vmem:[#allocation2 + $0x70] sm:$0xff]  ;;  %v492_v12 = vld [vmem:[#allocation2 + $0x28] ss:$0 sm:$0xff]  ;;  %v33_v16 = vld [vmem:[%s627_s1] sm:$0xff] }
   0xb   :  { %62 = vmatpush.msra.mxu0 %v37_v2  ;;  %v34_v22 = vld [vmem:[%s627_s1 + $0x8] sm:$0xff]  ;;  %v123_v26 = vld [vmem:[#allocation2 + $0x60] sm:$0xff]  ;;  %v122_v27 = vld [vmem:[#allocation2 + $0x58] sm:$0xff]  ;;  %s556_s1 = smov 96  }
   0xc   :  { %106 = vmatpush.msra.mxu1 %v82_v8  ;;  %484 = vmatpush.msra.mxu2 %v82_v8  ;;  %v124_v25 = vld [vmem:[#allocation2 + $0x68] sm:$0xff]  ;;  %v160_v28 = vld [vmem:[#allocation2 + $0x98] sm:$0xff]  ;;  %v159_v29 = vld [vmem:[#allocation2 + $0x90] sm:$0xff] }
   0xd   :  { %63 = vmatpush.msra.mxu0 %v36_v3  ;;  %181 = vmatpush.msra.mxu3 %v160_v28  ;;  %v493_v30 = vld [vmem:[#allocation2 + $0x50] ss:$0 sm:$0xff]  ;;  %v158_v39 = vld [vmem:[#allocation2 + $0x88] sm:$0xff]  ;;  %v157_v40 = vld [vmem:[#allocation2 + $0x80] sm:$0xff] }
   0xe   :  { %107 = vmatpush.msra.mxu1 %v81_v9  ;;  %485 = vmatpush.msra.mxu2 %v81_v9  ;;  %v494_v41 = vld [vmem:[#allocation2 + $0x78] ss:$0 sm:$0xff]  ;;  %v211_v46 = vld [vmem:[#allocation2 + $0xc0] sm:$0xff]  ;;  %v209_v48 = vld [vmem:[#allocation2 + $0xb0] sm:$0xff] }
   0xf   :  { %64 = vmatpush.msra.mxu0 %v35_v4  ;;  %182 = vmatpush.msra.mxu3 %v159_v29  ;;  %v210_v47 = vld [vmem:[#allocation2 + $0xb8] sm:$0xff]  ;;  %v495_v49 = vld [vmem:[#allocation2 + $0xa0] ss:$0 sm:$0xff]  ;;  %v208_v58 = vld [vmem:[#allocation2 + $0xa8] sm:$0xff] }
  0x10   :  { %465 = vmatmul.msk.f32.vlgmr.msra.gmra.mxu0 %vm42_vm0, %v31_v5  ;;  %108 = vmatpush.msra.mxu1 %v80_v10  ;;  %v262_v63 = vld [vmem:[#allocation2 + $0xe8] sm:$0xff]  ;;  %v261_v0 = vld [vmem:[#allocation2 + $0xe0] sm:$0xff]  ;;  %v260_v1 = vld [vmem:[#allocation2 + $0xd8] sm:$0xff] }
  0x11   :  { %486 = vmatpush.msra.mxu2 %v80_v10  ;;  %183 = vmatpush.msra.mxu3 %v158_v39  ;;  %v496_v2 = vld [vmem:[#allocation2 + $0xc8] ss:$0 sm:$0xff]  ;;  %v310_v28 = vld [vmem:[#allocation2 + $0xf8] sm:$0xff] }
  0x12   :  { %232 = vmatpush.msrb.mxu1 %v211_v46  ;;  %v409_v46 = vld [vmem:[#allocation2 + $0x180] sm:$0xff] }
  0x13   :  { %146 = vmatpush.msrb.mxu2 %v125_v11  ;;  %184 = vmatpush.msra.mxu3 %v157_v40  ;;  %v259_v11 = vld [vmem:[#allocation2 + $0xd0] sm:$0xff] }
  0x14   :  { %233 = vmatpush.msrb.mxu1 %v210_v47  ;;  %v408_v47 = vld [vmem:[#allocation2 + $0x178] sm:$0xff] }
  0x15   :  { %147 = vmatpush.msrb.mxu2 %v124_v25 }
  0x16   :  { %234 = vmatpush.msrb.mxu1 %v209_v48  ;;  %v407_v48 = vld [vmem:[#allocation2 + $0x170] sm:$0xff] }
  0x17   :  { %148 = vmatpush.msrb.mxu2 %v123_v26 }
  0x18   :  { %466 = vmatmul.msk.f32.gmra.mxu0 %vm42_vm0, %v32_v6  ;;  %235 = vmatpush.msrb.mxu1 %v208_v58  ;;  %v499_v58 = vld [vmem:[#allocation2 + $0x140] ss:$0 sm:$0xff] }
  0x19   :  { %149 = vmatpush.msrb.mxu2 %v122_v27 }
  0x8d   :  { %v66_v13 = vpop.f32.mrf.mxu0 }
  0x8e   :  { %v67_v14 = vadd.f32 %v492_v12, %v66_v13 }
  0x90   :  { %vm72_vm1 = vcmp.ge.f32.partialorder %v67_v14, 0.0  ;;  %v74_v15 = vmul.f32 0.01, %v67_v14 }
  0x92   :  { %v76_v17 = vsel %vm72_vm1, %v67_v14, %v74_v15 }
  0x93   :  { %v78_v18 = vadd.f32 %v76_v17, %v33_v16  ;;  %v313_v16 = vld [vmem:[#allocation2 + $0x110] sm:$0xff]  ;;  %v312_v17 = vld [vmem:[#allocation2 + $0x108] sm:$0xff] }
  0x94   :  { %334 = vmatpush.msrb.mxu3 %v313_v16 }
  0x95   :  { %v69_v19 = vpop.f32.mrf.mxu0  ;;  %467 = vmatmul.msk.f32.vlgmr.msra.gmra.mxu1 %vm86_vm2, %v78_v18  ;;  %v311_v18 = vld [vmem:[#allocation2 + $0x100] sm:$0xff] }
  0x96   :  { %v70_v20 = vadd.f32 %v492_v12, %v69_v19  ;;  %335 = vmatpush.msrb.mxu3 %v312_v17  ;;  %v497_v19 = vld [vmem:[#allocation2 + $0xf0] ss:$0 sm:$0xff]  ;;  %427 = vmatpush.msra.mxu1 %v409_v46 }
  0x98   :  { %vm73_vm3 = vcmp.ge.f32.partialorder %v70_v20, 0.0  ;;  %v75_v21 = vmul.f32 0.01, %v70_v20  ;;  %336 = vmatpush.msrb.mxu3 %v311_v18  ;;  %428 = vmatpush.msra.mxu1 %v408_v47 }
  0x9a   :  { %v77_v23 = vsel %vm73_vm3, %v70_v20, %v75_v21  ;;  %337 = vmatpush.msrb.mxu3 %v310_v28  ;;  %429 = vmatpush.msra.mxu1 %v407_v48 }
  0x9b   :  { %v79_v24 = vadd.f32 %v77_v23, %v34_v22 }
  0x9d   :  { %468 = vmatmul.msk.f32.vlgmr.msra.gmra.mxu2 %vm86_vm2, %v79_v24 }
  0x9e   :  { %283 = vmatpush.msra.mxu2 %v262_v63 }
  0xa0   :  { %284 = vmatpush.msra.mxu2 %v261_v0 }
  0xa2   :  { %285 = vmatpush.msra.mxu2 %v260_v1 }
  0xa4   :  { %286 = vmatpush.msra.mxu2 %v259_v11 }
 0x112   :  { %v110_v31 = vpop.f32.mrf.mxu1 }
 0x113   :  { %v111_v32 = vadd.f32 %v493_v30, %v110_v31 }
 0x115   :  { %vm116_vm4 = vcmp.ge.f32.partialorder %v111_v32, 0.0  ;;  %v118_v33 = vmul.f32 0.01, %v111_v32 }
 0x117   :  { %v120_v34 = vsel %vm116_vm4, %v111_v32, %v118_v33  ;;  %v364_v33 = vld [vmem:[#allocation2 + $0x138] sm:$0xff] }
 0x118   :  { %469 = vmatmul.msk.f32.vlgmr.msrb.gmra.mxu2 %vm86_vm2, %v120_v34  ;;  %v363_v34 = vld [vmem:[#allocation2 + $0x130] sm:$0xff]  ;;  %385 = vmatpush.msrb.mxu0 %v364_v33 }
 0x11a   :  { %386 = vmatpush.msrb.mxu0 %v363_v34 }
 0x120   :  { %v113_v35 = vpop.f32.mrf.mxu2 }
 0x121   :  { %v114_v36 = vadd.f32 %v493_v30, %v113_v35  ;;  %v362_v35 = vld [vmem:[#allocation2 + $0x128] sm:$0xff] }
 0x122   :  { %387 = vmatpush.msrb.mxu0 %v362_v35 }
 0x123   :  { %v119_v37 = vmul.f32 0.01, %v114_v36  ;;  %vm117_vm5 = vcmp.ge.f32.partialorder %v114_v36, 0.0 }
 0x125   :  { %v121_v38 = vsel %vm117_vm5, %v114_v36, %v119_v37  ;;  %v498_v36 = vld [vmem:[#allocation2 + $0x118] ss:$0 sm:$0xff] }
 0x126   :  { %470 = vmatmul.msk.f32.gmra.mxu2 %vm86_vm2, %v121_v38 }
 0x19b   :  { %v151_v42 = vpop.f32.mrf.mxu2 }
 0x19c   :  { %v152_v43 = vadd.f32 %v494_v41, %v151_v42 }
 0x19e   :  { %471 = vmatmul.msk.f32.vlgmr.msra.gmra.mxu3 %vm86_vm2, %v152_v43 }
 0x1a9   :  { %v154_v44 = vpop.f32.mrf.mxu2 }
 0x1aa   :  { %v155_v45 = vadd.f32 %v494_v41, %v154_v44 }
 0x1ac   :  { %472 = vmatmul.msk.f32.gmra.mxu3 %vm86_vm2, %v155_v45  ;;  %v361_v45 = vld [vmem:[#allocation2 + $0x120] sm:$0xff] }
 0x1ad   :  { %388 = vmatpush.msrb.mxu0 %v361_v45 }
 0x221   :  { %v186_v50 = vpop.f32.mrf.mxu3 }
 0x222   :  { %v187_v51 = vadd.f32 %v495_v49, %v186_v50  ;;  %v405_v50 = vld [vmem:[#allocation2 + $0x160] sm:$0xff] }
 0x224   :  { %vm192_vm6 = vcmp.ge.f32.partialorder %v187_v51, 0.0  ;;  %v194_v52 = vmul.f32 0.01, %v187_v51 }
 0x226   :  { %v196_v53 = vsel %vm192_vm6, %v187_v51, %v194_v52 }
 0x227   :  { %200 = vrot.lane.b32.xlu0 %v196_v53, %s556_s1 }
 0x22f   :  { %v189_v54 = vpop.f32.mrf.mxu3 }
 0x230   :  { %v190_v55 = vadd.f32 %v495_v49, %v189_v54  ;;  %v406_v49 = vld [vmem:[#allocation2 + $0x168] sm:$0xff] }
 0x231   :  { %430 = vmatpush.msra.mxu1 %v406_v49 }
 0x232   :  { %vm193_vm7 = vcmp.ge.f32.partialorder %v190_v55, 0.0  ;;  %v195_v56 = vmul.f32 0.01, %v190_v55 }
 0x233   :  { %431 = vmatpush.msra.mxu1 %v405_v50 }
 0x234   :  { %v197_v57 = vsel %vm193_vm7, %v190_v55, %v195_v56  ;;  %v403_v56 = vld [vmem:[#allocation2 + $0x150] sm:$0xff] }
 0x235   :  { %202 = vrot.lane.b32.xlu0 %v197_v57, %s556_s1  ;;  %v402_v57 = vld [vmem:[#allocation2 + $0x148] sm:$0xff] }
 0x299   :  { %v201_v59 = vpop.permute.xlu0 %200 }
 0x29a   :  { %v206_v60 = vadd.f32 %v201_v59, %v187_v51 }
 0x29c   :  { %473 = vmatmul.msk.f32.vlgmr.msrb.gmra.mxu1 %vm86_vm2, %v206_v60 }
 0x2a7   :  { %v203_v61 = vpop.permute.xlu0 %202 }
 0x2a8   :  { %v207_v62 = vadd.f32 %v203_v61, %v190_v55  ;;  %v404_v55 = vld [vmem:[#allocation2 + $0x158] sm:$0xff] }
 0x2a9   :  { %432 = vmatpush.msra.mxu1 %v404_v55 }
 0x2aa   :  { %474 = vmatmul.msk.f32.gmra.mxu1 %vm86_vm2, %v207_v62 }
 0x2ab   :  { %433 = vmatpush.msra.mxu1 %v403_v56 }
 0x2ad   :  { %434 = vmatpush.msra.mxu1 %v402_v57 }
 0x319   :  { %v237_v3 = vpop.f32.mrf.mxu1 }
 0x31a   :  { %v238_v4 = vadd.f32 %v496_v2, %v237_v3  ;;  %v500_v3 = vld [vmem:[#allocation2 + $0x188] ss:$0 sm:$0xff] }
 0x31c   :  { %vm243_vm8 = vcmp.ge.f32.partialorder %v238_v4, 0.0  ;;  %v245_v5 = vmul.f32 0.01, %v238_v4 }
 0x31e   :  { %v247_v6 = vsel %vm243_vm8, %v238_v4, %v245_v5 }
 0x31f   :  { %251 = vrot.lane.b32.xlu1 %v247_v6, %s556_s1 }
 0x327   :  { %v240_v7 = vpop.f32.mrf.mxu1 }
 0x328   :  { %v241_v8 = vadd.f32 %v496_v2, %v240_v7 }
 0x32a   :  { %vm244_vm9 = vcmp.ge.f32.partialorder %v241_v8, 0.0  ;;  %v246_v9 = vmul.f32 0.01, %v241_v8 }
 0x32c   :  { %v248_v10 = vsel %vm244_vm9, %v241_v8, %v246_v9 }
 0x32d   :  { %253 = vrot.lane.b32.xlu1 %v248_v10, %s556_s1 }
 0x391   :  { %v252_v12 = vpop.permute.xlu1 %251 }
 0x392   :  { %v257_v13 = vadd.f32 %v252_v12, %v238_v4 }
 0x394   :  { %475 = vmatmul.msk.f32.vlgmr.msra.gmra.mxu2 %vm86_vm2, %v257_v13 }
 0x39f   :  { %v254_v14 = vpop.permute.xlu1 %253 }
 0x3a0   :  { %v258_v15 = vadd.f32 %v254_v14, %v241_v8 }
 0x3a2   :  { %476 = vmatmul.msk.f32.gmra.mxu2 %vm86_vm2, %v258_v15 }
 0x417   :  { %v288_v20 = vpop.f32.mrf.mxu2 }
 0x418   :  { %v289_v21 = vadd.f32 %v497_v19, %v288_v20 }
 0x41a   :  { %vm294_vm10 = vcmp.ge.f32.partialorder %v289_v21, 0.0  ;;  %v296_v22 = vmul.f32 0.01, %v289_v21 }
 0x41c   :  { %v298_v23 = vsel %vm294_vm10, %v289_v21, %v296_v22 }
 0x41d   :  { %302 = vrot.lane.b32.xlu2 %v298_v23, %s556_s1 }
 0x425   :  { %v291_v24 = vpop.f32.mrf.mxu2 }
 0x426   :  { %v292_v25 = vadd.f32 %v497_v19, %v291_v24 }
 0x428   :  { %vm295_vm11 = vcmp.ge.f32.partialorder %v292_v25, 0.0  ;;  %v297_v26 = vmul.f32 0.01, %v292_v25 }
 0x42a   :  { %v299_v27 = vsel %vm295_vm11, %v292_v25, %v297_v26 }
 0x42b   :  { %304 = vrot.lane.b32.xlu2 %v299_v27, %s556_s1 }
 0x477   :  { %v303_v29 = vpop.permute.xlu2 %302 }
 0x478   :  { %v308_v30 = vadd.f32 %v303_v29, %v289_v21 }
 0x47a   :  { %477 = vmatmul.msk.f32.vlgmr.msrb.gmra.mxu3 %vm86_vm2, %v308_v30 }
 0x485   :  { %v305_v31 = vpop.permute.xlu2 %304 }
 0x486   :  { %v309_v32 = vadd.f32 %v305_v31, %v292_v25 }
 0x488   :  { %478 = vmatmul.msk.f32.gmra.mxu3 %vm86_vm2, %v309_v32 }
 0x4fd   :  { %v339_v37 = vpop.f32.mrf.mxu3 }
 0x4fe   :  { %v340_v38 = vadd.f32 %v498_v36, %v339_v37 }
 0x500   :  { %vm345_vm12 = vcmp.ge.f32.partialorder %v340_v38, 0.0  ;;  %v347_v39 = vmul.f32 0.01, %v340_v38 }
 0x502   :  { %v349_v40 = vsel %vm345_vm12, %v340_v38, %v347_v39 }
 0x503   :  { %353 = vrot.lane.b32.xlu0 %v349_v40, %s556_s1 }
 0x50b   :  { %v342_v41 = vpop.f32.mrf.mxu3 }
 0x50c   :  { %v343_v42 = vadd.f32 %v498_v36, %v342_v41 }
 0x50e   :  { %vm346_vm13 = vcmp.ge.f32.partialorder %v343_v42, 0.0  ;;  %v348_v43 = vmul.f32 0.01, %v343_v42 }
 0x510   :  { %v350_v44 = vsel %vm346_vm13, %v343_v42, %v348_v43 }
 0x511   :  { %355 = vrot.lane.b32.xlu1 %v350_v44, %s556_s1 }
 0x575   :  { %v354_v51 = vpop.permute.xlu0 %353 }
 0x576   :  { %v359_v52 = vadd.f32 %v354_v51, %v340_v38 }
 0x578   :  { %479 = vmatmul.msk.f32.vlgmr.msrb.gmra.mxu0 %vm86_vm2, %v359_v52 }
 0x583   :  { %v356_v53 = vpop.permute.xlu1 %355 }
 0x584   :  { %v360_v54 = vadd.f32 %v356_v53, %v343_v42 }
 0x586   :  { %480 = vmatmul.msk.f32.gmra.mxu0 %vm86_vm2, %v360_v54 }
 0x5f5   :  { %v390_v59 = vpop.f32.mrf.mxu0 }
 0x5f6   :  { %v391_v60 = vadd.f32 %v499_v58, %v390_v59 }
 0x5f8   :  { %vm396_vm14 = vcmp.ge.f32.partialorder %v391_v60, 0.0  ;;  %v398_v61 = vmul.f32 0.01, %v391_v60 }
 0x5fa   :  { %v400_v62 = vsel %vm396_vm14, %v391_v60, %v398_v61 }
 0x5fb   :  { %481 = vmatmul.msk.f32.vlgmr.msra.gmra.mxu1 %vm412_vm15, %v400_v62 }
 0x603   :  { %v393_v63 = vpop.f32.mrf.mxu0 }
 0x604   :  { %v394_v0 = vadd.f32 %v499_v58, %v393_v63 }
 0x606   :  { %v399_v1 = vmul.f32 0.01, %v394_v0  ;;  %vm397_vm0 = vcmp.ge.f32.partialorder %v394_v0, 0.0 }
 0x608   :  { %v401_v2 = vsel %vm397_vm0, %v394_v0, %v399_v1 }
 0x609   :  { %482 = vmatmul.msk.f32.gmra.mxu1 %vm412_vm15, %v401_v2 }
 0x678   :  { %v436_v4 = vpop.f32.mrf.mxu1 }
 0x679   :  { %v437_v5 = vadd.f32 %v500_v3, %v436_v4 }
 0x67b   :  { %v442_v6 = vadd.f32 %v437_v5, %v359_v52 }
 0x67d   :  { %444 = vst.msk [vmem:[#allocation5] sm:$0xff] %vm86_vm2, %v442_v6 }
 0x686   :  { %v439_v7 = vpop.f32.mrf.mxu1 }
 0x687   :  { %v440_v8 = vadd.f32 %v500_v3, %v439_v7 }
 0x689   :  { %v443_v9 = vadd.f32 %v440_v8, %v360_v54 }
 0x68b   :  { %445 = vst.msk [vmem:[#allocation5 + $0x8] sm:$0xff] %vm86_vm2, %v443_v9 }
 0x68c   :  { %458 = dma.vmem_to_hbm [thread:$0]  %s451_s26, 256, %s453_s29, [#allocation4], %s554_s17, %s554_s17, %s555_s18  }
 0x68d   :  { %551 = dma.done.wait [#allocation4], 256  }
 0x68e   :  { %552 = vsyncadd [#allocation4], 4294967040 }
 0x68f   :  { %463 = vsyncpa [#allocation3], 1 }
 0x690   :  { %464 = vsyncpa [#allocation4], 1 }

</bundles_post_ra>
